<compile_context>
chip_gen: v6e
topology: v6e:2x2x1
jax: 0.10.0
libtpu: 0.0.40
codegen_flags: <defaults>
</compile_context>

<pallas_src>
import functools

import jax
import jax.numpy as jnp
from jax.experimental import pallas as pl
from jax.experimental.pallas import tpu as pltpu

_LANE = 128
_TARGET_BLOCK_BYTES = 6 * 1024 * 1024   # per-step input block target
_MAX_TILE_ROWS = 8192


def _cdiv(a, b):
    return -(-a // b)


def _round_up(a, m):
    return _cdiv(a, m) * m


def _sum_kernel(x_ref, o_ref, *, rows, tile_rows, tiles_per_split, lanes,
                need_mask):
    """Accumulate lane-binned per-channel sums for one (batch, split) pair."""
    si = pl.program_id(1)
    ti = pl.program_id(2)

    @pl.when(ti == 0)
    def _init():
        o_ref[...] = jnp.zeros_like(o_ref)

    x = x_ref[0]                                     # (3, T, lanes), input dtype
    if need_mask:
        # Zero rows past the true spatial extent (ragged last row-tile).
        row0 = (si * tiles_per_split + ti) * tile_rows
        rem = rows - row0                            # dynamic scalar, > 0 here
        ridx = jax.lax.broadcasted_iota(jnp.int32, (tile_rows, lanes), 0)
        x = jnp.where((ridx < rem)[None], x, jnp.zeros((), x.dtype))
    if x.dtype != jnp.float32:
        x = x.astype(jnp.float32)
    # Single whole-block accumulate: rows -> lane-binned (3, lanes) sums.
    o_ref[0, 0] += jnp.sum(x, axis=1)


def l_color(x, *, max_tile_rows=_MAX_TILE_ROWS):
    """Zero-DCE L_color: x (B, 3, H, W) -> k (B, 1, 1, 1) (same as forward)."""
    b, c, h, w = x.shape
    assert c == 3, "L_color expects 3 (RGB) channels"
    hw = h * w
    out_dtype = x.dtype if jnp.issubdtype(x.dtype, jnp.floating) else jnp.float32

    itemsize = jnp.dtype(x.dtype).itemsize
    sub = {4: 8, 2: 16, 1: 32}.get(itemsize, 8)      # dtype-aware sublane packing

    # Spatial view: lane-dense (rows, 128) when possible (free reshape, no
    # padding copy); otherwise tile the original (H, W) plane directly.
    if hw % _LANE == 0:
        rows, lanes = hw // _LANE, _LANE
        xv = x.reshape(b, c, rows, lanes)
    else:
        rows, lanes = h, w
        xv = x
    lanes_pad = _round_up(lanes, _LANE)

    # Tile size: ~_TARGET_BLOCK_BYTES per block, rounded to the dtype's
    # sublane packing, capped at max_tile_rows.
    t_max = _TARGET_BLOCK_BYTES // (c * lanes_pad * itemsize)
    t_max = min(t_max, max_tile_rows)
    t_max = max(sub, (t_max // sub) * sub)
    if rows <= t_max:
        tile_rows, nt_total = rows, 1                # single tile == full dim
    else:
        tile_rows, nt_total = t_max, _cdiv(rows, t_max)
    need_mask = (tile_rows * nt_total != rows)

    # Split the spatial reduction across two parallel grid slots when the
    # batch alone cannot occupy both v7x TensorCores (no effect on v5e/v6e).
    split = 2 if (b == 1 and nt_total >= 8 and nt_total % 2 == 0) else 1
    nt = nt_total // split

    blk_bytes = c * max(tile_rows, sub) * lanes_pad * itemsize
    vmem_limit = int(min(40 * 1024 * 1024, max(16 * 1024 * 1024, 6 * blk_bytes)))

    kernel = functools.partial(
        _sum_kernel, rows=rows, tile_rows=tile_rows, tiles_per_split=nt,
        lanes=lanes, need_mask=need_mask)

    partial_sums = pl.pallas_call(
        kernel,
        out_shape=jax.ShapeDtypeStruct((b, split, c, lanes), jnp.float32),
        grid_spec=pltpu.PrefetchScalarGridSpec(
            num_scalar_prefetch=0,
            grid=(b, split, nt),
            in_specs=[pl.BlockSpec(
                (1, c, tile_rows, lanes),
                lambda bi, si, ti: (bi, 0, si * nt + ti, 0))],
            out_specs=pl.BlockSpec(
                (1, 1, c, lanes),
                lambda bi, si, ti: (bi, si, 0, 0)),
        ),
        compiler_params=pltpu.CompilerParams(
            dimension_semantics=("parallel", "parallel", "arbitrary"),
            vmem_limit_bytes=vmem_limit,
        ),
        cost_estimate=pl.CostEstimate(
            flops=b * c * hw,
            transcendentals=0,
            bytes_accessed=b * c * hw * itemsize + b * split * c * lanes * 4,
        ),
    )(xv)

    # O(B) epilogue: combine lane/split partials -> means -> Drg/Drb/Dgb -> k.
    sums = jnp.sum(partial_sums, axis=(1, 3))                    # (B, 3) f32
    mean_rgb = sums * jnp.float32(1.0 / float(hw))
    mr, mg, mb = mean_rgb[:, 0], mean_rgb[:, 1], mean_rgb[:, 2]
    drg = jnp.square(mr - mg)
    drb = jnp.square(mr - mb)
    dgb = jnp.square(mb - mg)
    k = jnp.sqrt(jnp.square(drg) + jnp.square(drb) + jnp.square(dgb))
    return k.reshape(b, 1, 1, 1).astype(out_dtype)


def _reference(x):
    """Pure-JAX mirror of the PyTorch L_color.forward."""
    mean_rgb = jnp.mean(x.astype(jnp.float32), axis=(2, 3), keepdims=True)
    mr, mg, mb = mean_rgb[:, 0:1], mean_rgb[:, 1:2], mean_rgb[:, 2:3]
    drg = (mr - mg) ** 2
    drb = (mr - mb) ** 2
    dgb = (mb - mg) ** 2
    return jnp.sqrt(drg ** 2 + drb ** 2 + dgb ** 2)


if __name__ == "__main__":
    key = jax.random.PRNGKey(0)

    # 1) Main lane-dense path (HW % 128 == 0, single tile).
    x1 = jax.random.uniform(key, (2, 3, 16, 16), dtype=jnp.float32)
    r1 = jax.block_until_ready(l_color(x1))
    ref1 = _reference(x1)
    assert r1.shape == ref1.shape, (r1.shape, ref1.shape)
    assert jnp.allclose(r1, ref1, atol=1e-6, rtol=1e-3), (r1, ref1)

    # 2) Fallback path (HW not a multiple of 128): tiles (H, W) directly.
    x2 = jax.random.uniform(jax.random.PRNGKey(1), (1, 3, 17, 19),
                            dtype=jnp.float32)
    r2 = jax.block_until_ready(l_color(x2))
    ref2 = _reference(x2)
    assert r2.shape == ref2.shape, (r2.shape, ref2.shape)
    assert jnp.allclose(r2, ref2, atol=1e-6, rtol=1e-3), (r2, ref2)

    # 3) Ragged-tail masking + 2-way spatial split (forced small tiles).
    x3 = jax.random.uniform(jax.random.PRNGKey(2), (1, 3, 90, 128),
                            dtype=jnp.float32)
    r3 = jax.block_until_ready(l_color(x3, max_tile_rows=8))
    ref3 = _reference(x3)
    assert r3.shape == ref3.shape, (r3.shape, ref3.shape)
    assert jnp.allclose(r3, ref3, atol=1e-6, rtol=1e-3), (r3, ref3)

    print("KERNEL_OK")
</pallas_src>

<mosaic_0001>
module attributes {stable_mosaic.version = 11 : i64} {
  func.func @_sum_kernel(%arg0: i32, %arg1: i32, %arg2: i32, %arg3: memref<1x3x2x128xf32, #tpu.memory_space<vmem>>, %arg4: memref<1x1x3x128xf32, #tpu.memory_space<vmem>>) attributes {dimension_semantics = [#tpu.dimension_semantics<parallel>, #tpu.dimension_semantics<parallel>, #tpu.dimension_semantics<arbitrary>], iteration_bounds = array<i64: 2, 1, 1>, scalar_prefetch = 0 : i64, scratch_operands = 0 : i64, tpu.core_type = #tpu.core_type<tc>, window_params = [{transform_indices = @transform_0, window_bounds = array<i64: 1, 3, 2, 128>}, {transform_indices = @transform_1, window_bounds = array<i64: 1, 1, 3, 128>}]} {
    %c0_i32 = arith.constant 0 : i32
    %0 = arith.cmpi eq, %arg2, %c0_i32 : i32
    %1 = arith.extui %0 : i1 to i32
    %c0_i32_0 = arith.constant 0 : i32
    %2 = arith.cmpi ne, %1, %c0_i32_0 : i32
    scf.if %2 {
      %cst_12 = arith.constant 0.000000e+00 : f32
      %12 = vector.broadcast %cst_12 : f32 to vector<1x1x3x128xf32>
      %c0_13 = arith.constant 0 : index
      %c0_14 = arith.constant 0 : index
      %c0_15 = arith.constant 0 : index
      %c0_16 = arith.constant 0 : index
      %13 = vector.load %arg4[%c0_13, %c0_14, %c0_15, %c0_16] : memref<1x1x3x128xf32, #tpu.memory_space<vmem>>, vector<1x1x3x128xf32>
      tpu.vector_store %arg4[%c0_13, %c0_14, %c0_15, %c0_16], %12 {strides = array<i32>} : memref<1x1x3x128xf32, #tpu.memory_space<vmem>>, vector<1x1x3x128xf32>,
    } else {
    }
    %c0 = arith.constant 0 : index
    %c0_1 = arith.constant 0 : index
    %c0_2 = arith.constant 0 : index
    %c0_3 = arith.constant 0 : index
    %3 = vector.load %arg3[%c0, %c0_1, %c0_2, %c0_3] : memref<1x3x2x128xf32, #tpu.memory_space<vmem>>, vector<1x3x2x128xf32>
    %4 = vector.shape_cast %3 : vector<1x3x2x128xf32> to vector<3x2x128xf32>
    %c0_4 = arith.constant 0 : index
    %c0_5 = arith.constant 0 : index
    %c0_6 = arith.constant 0 : index
    %c0_7 = arith.constant 0 : index
    %5 = vector.load %arg4[%c0_4, %c0_5, %c0_6, %c0_7] : memref<1x1x3x128xf32, #tpu.memory_space<vmem>>, vector<1x1x3x128xf32>
    %6 = vector.shape_cast %5 : vector<1x1x3x128xf32> to vector<3x128xf32>
    %cst = arith.constant dense<0.000000e+00> : vector<3x128xf32>
    %7 = vector.multi_reduction <add>, %4, %cst [1] : vector<3x2x128xf32> to vector<3x128xf32>
    %8 = arith.addf %6, %7 : vector<3x128xf32>
    %c0_8 = arith.constant 0 : index
    %c0_9 = arith.constant 0 : index
    %c0_10 = arith.constant 0 : index
    %c0_11 = arith.constant 0 : index
    %9 = vector.load %arg4[%c0_8, %c0_9, %c0_10, %c0_11] : memref<1x1x3x128xf32, #tpu.memory_space<vmem>>, vector<1x1x3x128xf32>
    %10 = vector.shape_cast %9 : vector<1x1x3x128xf32> to vector<3x128xf32>
    %11 = vector.shape_cast %8 : vector<3x128xf32> to vector<1x1x3x128xf32>
    tpu.vector_store %arg4[%c0_8, %c0_9, %c0_10, %c0_11], %11 {strides = array<i32>} : memref<1x1x3x128xf32, #tpu.memory_space<vmem>>, vector<1x1x3x128xf32>,
    return
  }
  func.func @transform_0(%arg0: i32, %arg1: i32, %arg2: i32) -> (i32, i32, i32, i32) {
    %c1_i32 = arith.constant 1 : i32
    %0 = arith.muli %arg1, %c1_i32 : i32
    %1 = arith.addi %0, %arg2 : i32
    %c0_i32 = arith.constant 0 : i32
    %c0_i32_0 = arith.constant 0 : i32
    %c0_i32_1 = arith.constant 0 : i32
    return %arg0, %c0_i32, %1, %c0_i32_0 : i32, i32, i32, i32
  }
  func.func @transform_1(%arg0: i32, %arg1: i32, %arg2: i32) -> (i32, i32, i32, i32) {
    %c0_i32 = arith.constant 0 : i32
    %c0_i32_0 = arith.constant 0 : i32
    %c0_i32_1 = arith.constant 0 : i32
    return %arg0, %arg1, %c0_i32, %c0_i32_0 : i32, i32, i32, i32
  }
}

</mosaic_0001>

<bundles_post_ra>
// kernel: tpu_custom_call.1
= control target key start
LH: loop header
LB: loop body
LE: loop exit
PB: predicated region body
PF: predicated region fallthrough
CT: control target
= control target key end

     0   :  { %6 = vsyncpa [#allocation3], 0  ;;  %s558_s0 = inlined_call_operand.hbm [shape: f32[2,3,2,128], index: 0, kind: input, shape index: {}]   ;;  %s559_s1 = inlined_call_operand.vmem [shape: f32[2,1,3,128], index: 1, kind: output, shape index: {}]  }
   0x1   :  { %8 = vsyncpa [#allocation3 + $0x1], 0  ;;  %s463_s6 = smov 0   ;;  %s465_s7 = smov 0  }
   0x2   :  { %s467_s8 = smov 0   ;;  %s469_s9 = smov 0  }
   0x3   :  { %s471_s10 = smov 0   ;;  %s473_s11 = smov 0  }
   0x4 LB: > { %s299_s12 = sadd.s32 4294967295, %s447_s11   ;;  %s33_s13 = sadd.s32 1, %s443_s10  ;;  %s447_s11 = sphi %s473_s11, %s14_s11   ;;  %s443_s10 = sphi %s471_s10, %s566_s10   ;;  %s439_s9 = sphi %s469_s9, %s565_s9   ;;  %s435_s8 = sphi %s467_s8, %s564_s8   ;;  %s431_s7 = sphi %s465_s7, %s563_s7   ;;  %s427_s6 = sphi %s463_s6, %s562_s6  }
   0x5   : > { %p35_p0 = scmp.ge.s32.totalorder %s33_s13, 2  ;;  %s44_s14 = sadd.s32 1, %s435_s8 }
   0x6   : > { %p51_p1 = scmp.ne.s32.totalorder %s435_s8, %s431_s7  ;;  %p52_p2 = scmp.eq.s32.totalorder %s447_s11, 0 }
   0x7   : > { %s568_s13 = smov (%p35_p0, %s33_s13), 0  ;;  %p57_p4 = scmp.ne.s32.totalorder %s431_s7, %s427_s6 }
   0x8   : > { %p53_p3 = por %p52_p2, %p51_p1  ;;  %s39_s15 = ssub.s32 %s443_s10, %s568_s13 }
   0x9   : > { %p58_p5 = scmp.eq.s32.totalorder %s299_s12, 0  ;;  %p42_p6 = scmp.eq.s32.totalorder %s39_s15, 0 }
   0xa   : > { %p317_p8 = scmp.lt.s32.totalorder %s447_s11, 2  ;;  %s109_s18 = sand.u32 1, %s435_s8  }
   0xb   : > { %p502_p7 = por %p58_p5, %p57_p4  ;;  %s309_s19 = smul.u32 96, %s443_s10 }
   0xc   : > { %s508_s17 = scalar_select %p42_p6, %s435_s8, %s44_s14  }
   0xd   : > { %s308_s20 = smul.u32 6, %s109_s18  ;;  %s121_s23 = scalar_lea.hbm %s558_s0, %s309_s19 }
   0xe   : > { %p515_p9 = pnand %p317_p8, %p53_p3  ;;  %s110_s27 = scalar_lea.sflag [#allocation3], %s109_s18 }
   0xf   : > { %s113_s25 = scalar_lea.vmem [#allocation2], %s308_s20  ;;  %s449_s29 = smov [#allocation2]  }
  0x10   : > { %s122_s26 = sshll.u32 %s113_s25, 4  ;;  %p371_p10 = pneg %p515_p9  ;;  %s123_s26 = int_to_ptr.vmem [resolvable:$true] %s122_s26 }
  0x11   : > { %s382_s28 = scalar_lea.vmem %s123_s26, 96  ;;  %s387_s30 = sshll.u32 %s449_s29, 4  ;;  %s388_s30 = int_to_ptr.vmem [resolvable:$false] %s387_s30 }
  0x12   : > { %p383_p11 = scmp.ne.s32.totalorder %s123_s26, %s382_s28  ;;  %s389_s2 = scalar_lea.vmem %s388_s30, 192 }
  0x13   : > { %p390_p0 = scmp.lt.s32.totalorder %s123_s26, %s388_s30  ;;  %p391_p1 = scmp.lt.s32.totalorder %s389_s2, %s382_s28 }
  0x14   : > { %p385_p12 = pnand %p383_p11, %p371_p10 }
  0x15   : > { %p392_p2 = por %p391_p1, %p390_p0 }
  0x16   : > { %p386_p13 = pneg %p385_p12 }
  0x18   : > { %p393_p3 = pnand %p392_p2, %p386_p13 }
  0x1a   : > { %396 = shalt.err (!%p393_p3)
}
  0x1b   : > { %s450_s3 = smov 32   ;;  %s451_s4 = smov 2  }
  0x1c   : > { %316 = dma.hbm_to_vmem [thread:$0]  (!%p515_p9), %s121_s23, 96, %s123_s26, %s110_s27, %s450_s3, %s450_s3, %s451_s4  }
  0x1d   : > { %p304_p4 = scmp.ge.s32.totalorder %s447_s11, 1  ;;  %p130_p5 = scmp.lt.s32.totalorder %s447_s11, 3 }
  0x1f   : > { %p131_p6 = pnand %p304_p4, %p130_p5 }
  0x20   : > { %s136_s5 = sand.u32 (!%p131_p6), 1, %s431_s7  }
  0x21   : > { %134 = sbr.rel (%p131_p6) target bundleno = 59 (0x3b), region = 24  ;;  %s137_s12 = scalar_lea.sflag (!%p131_p6), [#allocation3], %s136_s5 }
  0x22   : > { %s310_s6 = smul.u32 (!%p131_p6), 6, %s136_s5 }
  0x24   : > { %s140_s14 = scalar_lea.vmem (!%p131_p6), [#allocation2], %s310_s6 }
  0x26   : > { %422 = dma.done.wait (%p502_p7), %s137_s12, 96  }
  0x27   : > { %424 = vsyncadd (%p502_p7), %s137_s12, 4294967200  ;;  %p162_p8 = scmp.lt.s32.totalorder %s439_s9, 1  ;;  %vm178_vm0 = vcmask 1041408   ;;  %v452_v0 = vmov 0.0   ;;  %v174_v1 = vld [vmem:[%s140_s14] sm:$0x3] }
  0x28   : > { %v175_v2 = vld [vmem:[%s140_s14 + $0x2] sm:$0x3]  ;;  %v176_v3 = vld [vmem:[%s140_s14 + $0x4] sm:$0x3]  ;;  %v179_v4 = vsel %vm178_vm0, %v174_v1, 0.0  ;;  %vm203_vm1 = vcmask 1041409  }
  0x29   : > { %s570_s9 = smov (!%p162_p8, %s439_s9), 1  ;;  %v186_v5 = vsel %vm178_vm0, %v175_v2, 0.0  ;;  %v193_v6 = vsel %vm178_vm0, %v176_v3, 0.0  ;;  %v180_v7 = vrot.slane %v179_v4, 4  ;;  %vm205_vm2 = vcmask 1042434  }
  0x2a   : > { %s305_s15 = sshll.u32 %s570_s9, 2  ;;  %v187_v8 = vrot.slane %v186_v5, 4  ;;  %v194_v9 = vrot.slane %v193_v6, 4 }
  0x2b   : > { %s535_s20 = scalar_lea.vmem %s559_s1, %s305_s15  ;;  %v181_v10 = vadd.f32 %v180_v7, %v179_v4 }
  0x2c   : > { %173 = vst [vmem:[%s535_s20] sm:$0x7] %v452_v0  ;;  %v188_v11 = vadd.f32 %v187_v8, %v186_v5  ;;  %v195_v12 = vadd.f32 %v194_v9, %v193_v6 }
  0x2d   : > { %v182_v13 = vrot.slane %v181_v10, 2 }
  0x2e   : > { %v189_v14 = vrot.slane %v188_v11, 2  ;;  %v196_v15 = vrot.slane %v195_v12, 2 }
  0x2f   : > { %v183_v16 = vadd.f32 %v182_v13, %v181_v10 }
  0x30   : > { %v190_v17 = vadd.f32 %v189_v14, %v188_v11  ;;  %v197_v18 = vadd.f32 %v196_v15, %v195_v12 }
  0x31   : > { %v184_v19 = vrot.slane %v183_v16, 1 }
  0x32   : > { %v191_v20 = vrot.slane %v190_v17, 1  ;;  %v198_v21 = vrot.slane %v197_v18, 1 }
  0x33   : > { %v185_v22 = vadd.f32 %v184_v19, %v183_v16  ;;  %v177_v25 = vld [vmem:[%s535_s20] sm:$0x7] }
  0x34   : > { %v192_v23 = vadd.f32 %v191_v20, %v190_v17  ;;  %v199_v24 = vadd.f32 %v198_v21, %v197_v18 }
  0x36   : > { %v204_v26 = vsel %vm203_vm1, %v192_v23, %v185_v22 }
  0x37   : > { %v206_v27 = vsel %vm205_vm2, %v199_v24, %v204_v26 }
  0x38   : > { %v208_v28 = vadd.f32 %v206_v27, %v177_v25 }
  0x3a   : > { %209 = vst [vmem:[%s535_s20] sm:$0x7] %v208_v28 }
  0x3b PF: > { %s14_s11 = sadd.s32 1, %s447_s11   ;;  %s562_s6 = smov %s431_s7 }
  0x3c   : > { %p11_p7 = scmp.ge.s32.totalorder %s14_s11, 4   ;;  %s563_s7 = smov %s435_s8 }
  0x3d   : > { %s564_s8 = smov %s508_s17  ;;  %s565_s9 = smov %s443_s10 }
  0x3e   : > { %s566_s10 = smov %s568_s13  ;;  %13 = sbr.rel (!%p11_p7) target bundleno = 4 (0x4), region = 68 }
  0x43   :  { %235 = vsyncpa [#allocation3], 1 }
  0x44   :  { %237 = vsyncpa [#allocation3 + $0x1], 1 }

</bundles_post_ra>
